<compile_context>
chip_gen: v7x
topology: tpu7x:2x2x1
jax: 0.10.0
libtpu: 0.0.40
codegen_flags: <defaults>
</compile_context>

<pallas_src>
import functools
import math

import jax
import jax.numpy as jnp
from jax.experimental import pallas as pl
from jax.experimental.pallas import tpu as pltpu

D_K = 32  # config.d_k (head dimension)


# --------------------------------------------------------------------------------------
# Kernels
# --------------------------------------------------------------------------------------

def _attention_kernel(q_ref, k_ref, v_ref, o_ref, *, mxu_dtype, scale):
    """Single-pass attention for a group of G heads. All blocks are (G, S, D)."""
    # Fold 1/sqrt(d_k) into q: S*D multiplies per head instead of S*S on the scores.
    q = q_ref[...] * scale
    k = k_ref[...]
    v = v_ref[...]
    if mxu_dtype is not None and q.dtype != mxu_dtype:
        q = q.astype(mxu_dtype)
        k = k.astype(mxu_dtype)
        v = v.astype(mxu_dtype)

    # Batched Q.K^T contracting the last dims of both operands directly:
    # no explicit k.T -> no XLU transpose / materialized (D, S) VMEM copy.
    scores = jnp.einsum("gqd,gkd->gqk", q, k,
                        preferred_element_type=jnp.float32)        # (G, S, S) f32

    # pad_mask intentionally NOT applied: in the PyTorch reference the result of
    # `attention.masked_fill(pad_mask, -1e9)` is discarded (not in-place), so the
    # mask has no effect on the module's output.

    m = jnp.max(scores, axis=-1, keepdims=True)
    # TODO(synk): on v6e/v7x the single EUP port can be the binding slot; a bf16 exp
    # (keeping m/denom in f32) would ~2x its throughput there, but v5e has no bf16 EUP.
    p = jnp.exp(scores - m)
    denom = jnp.sum(p, axis=-1, keepdims=True)

    ctx = jnp.einsum("gqk,gkd->gqd", p.astype(v.dtype), v,
                     preferred_element_type=jnp.float32)           # (G, S, D) f32
    # Deferred normalization: rescale S*D elements instead of S*S; EUP approx vrcp.
    ctx = ctx * pl.reciprocal(denom, approx=True)
    o_ref[...] = ctx.astype(o_ref.dtype)


def _flash_attention_kernel(q_ref, k_ref, v_ref, o_ref, m_sc, l_sc, acc_sc, *,
                            mxu_dtype, scale):
    """KV-tiled online-softmax attention for long sequences.

    q/o blocks are (G, S, D) and stay resident across the KV grid axis; k/v blocks are
    (G, Tk, D). Scratch: m (G,S,1), l (G,S,1), acc (G,S,D), all f32.
    """
    kv = pl.program_id(1)

    @pl.when(kv == 0)
    def _init():
        m_sc[...] = jnp.full(m_sc.shape, -jnp.inf, dtype=m_sc.dtype)
        l_sc[...] = jnp.zeros(l_sc.shape, dtype=l_sc.dtype)
        acc_sc[...] = jnp.zeros(acc_sc.shape, dtype=acc_sc.dtype)

    q = q_ref[...] * scale
    k = k_ref[...]
    v = v_ref[...]
    if mxu_dtype is not None and q.dtype != mxu_dtype:
        q = q.astype(mxu_dtype)
        k = k.astype(mxu_dtype)
        v = v.astype(mxu_dtype)

    s = jnp.einsum("gqd,gkd->gqk", q, k,
                   preferred_element_type=jnp.float32)             # (G, S, Tk) f32

    m_prev = m_sc[...]
    m_new = jnp.maximum(m_prev, jnp.max(s, axis=-1, keepdims=True))
    alpha = jnp.exp(m_prev - m_new)
    p = jnp.exp(s - m_new)
    l_sc[...] = alpha * l_sc[...] + jnp.sum(p, axis=-1, keepdims=True)
    acc_sc[...] = alpha * acc_sc[...] + jnp.einsum(
        "gqk,gkd->gqd", p.astype(v.dtype), v, preferred_element_type=jnp.float32)
    m_sc[...] = m_new

    @pl.when(kv == pl.num_programs(1) - 1)
    def _finalize():
        o_ref[...] = (acc_sc[...] * pl.reciprocal(l_sc[...], approx=True)
                      ).astype(o_ref.dtype)


# --------------------------------------------------------------------------------------
# Tiling / capacity plumbing
# --------------------------------------------------------------------------------------

def _vmem_budget_bytes():
    """Hardware-derived (vmem_limit for CompilerParams, budget for the tile picker)."""
    cap = None
    try:
        cap = getattr(pltpu.get_tpu_info(), "vmem_capacity_bytes", None)
    except Exception:
        cap = None
    if not cap:
        cap = 64 * 1024 * 1024  # conservative default (v7x: 64 MiB per TensorCore)
    vmem_limit = (cap * 3) // 4                      # 128 MiB -> 96 MiB, 64 MiB -> 48 MiB
    budget = max(vmem_limit - 8 * 1024 * 1024,       # headroom for compiler scratch
                 16 * 1024 * 1024)
    return int(vmem_limit), int(budget)


def _prefer_multi_step(bh, candidates):
    """Prefer group sizes that leave >= 2 (ideally an even number of) grid steps on the
    parallel axis so both TensorCores of a dual-TC chip (v7x) get work."""
    if bh < 2 or not candidates:
        return candidates
    multi = [g for g in candidates if bh // g >= 2]
    if not multi:
        return candidates
    even = [g for g in multi if (bh // g) % 2 == 0]
    return even if even else multi


def _pick_group_size(bh, s, d, in_bytes, out_bytes, mxu_bytes, budget, max_group=16):
    """Largest divisor of B*H whose single-pass per-step footprint fits the budget.
    Returns None if even G=1 does not fit (caller falls back to the flash path)."""
    def step_bytes(g):
        io = 2 * 3 * g * s * d * in_bytes + 2 * g * s * d * out_bytes  # dbl-buffered blocks
        cast = 3 * g * s * d * mxu_bytes if mxu_bytes != in_bytes else 0
        tmp = g * s * s * (4 + 4 + mxu_bytes)   # f32 scores + f32 exp + low-precision p
        tmp += g * s * d * 4                    # f32 context before the output cast
        return int((io + cast + tmp) * 1.15)    # slack for vregs / alignment padding

    divisors = [g for g in range(1, min(bh, max_group) + 1) if bh % g == 0]
    feasible = [g for g in divisors if step_bytes(g) <= budget]
    if not feasible:
        return None
    return max(_prefer_multi_step(bh, feasible))


def _pick_flash_tiling(bh, s, d, in_bytes, out_bytes, mxu_bytes, budget, max_group=8):
    """Pick (group_size, kv_tile) for the KV-tiled online-softmax path."""
    def step_bytes(g, tk):
        io = 2 * g * s * d * in_bytes                # q block (resident, double-buffered)
        io += 2 * 2 * g * tk * d * in_bytes          # k, v blocks, double-buffered
        io += 2 * g * s * d * out_bytes              # output block
        cast = ((g * s * d + 2 * g * tk * d) * mxu_bytes
                if mxu_bytes != in_bytes else 0)
        scratch = 2 * g * s * 4 + g * s * d * 4      # m, l, acc accumulators (f32)
        tmp = g * s * tk * (4 + 4 + mxu_bytes) + g * s * d * 4
        return int((io + cast + scratch + tmp) * 1.15)

    if s % 8 == 0:
        kv_tiles = [t for t in (512, 256, 128, 64, 32, 16, 8) if t <= s and s % t == 0]
    else:
        kv_tiles = []
    if not kv_tiles:
        kv_tiles = [s]  # (8,128)-rule: a KV block must be 8-aligned or span full S

    divisors = [g for g in range(1, min(bh, max_group) + 1) if bh % g == 0]
    feasible = [g for g in divisors if step_bytes(g, kv_tiles[-1]) <= budget]
    if not feasible:
        feasible = [1]
    g = max(_prefer_multi_step(bh, feasible))
    tk = next((t for t in kv_tiles if step_bytes(g, t) <= budget), kv_tiles[-1])
    return g, tk


# --------------------------------------------------------------------------------------
# Wrapper
# --------------------------------------------------------------------------------------

def scale_forward(q, k, v, pad_mask=None, *, group_size=None, kv_tile=None,
                  use_bf16_mxu=True, force_flash=False):
    """Scaled dot-product attention matching `Scale.forward` semantics.

    q, k, v: [B, H, S, D]; f32 or bf16 (bf16 in -> bf16 out, halving HBM traffic).
    pad_mask is accepted for API parity but — faithfully to the reference, whose
    masked_fill is not in-place — has no effect on the output.
    """
    del pad_mask  # no-op in the reference (masked_fill result is discarded)
    B, H, S, D = q.shape
    assert D == D_K, f"expected head dim {D_K}, got {D}"
    BH = B * H
    scale = 1.0 / math.sqrt(D_K)

    in_bytes = q.dtype.itemsize
    out_dtype = q.dtype
    out_bytes = jnp.dtype(out_dtype).itemsize
    if q.dtype == jnp.bfloat16:
        mxu_dtype, mxu_bytes = None, in_bytes   # already bf16 end-to-end; no casts
    elif use_bf16_mxu:
        mxu_dtype, mxu_bytes = jnp.bfloat16, 2
    else:
        mxu_dtype, mxu_bytes = None, in_bytes

    vmem_limit, budget = _vmem_budget_bytes()

    qf = q.reshape(BH, S, D)
    kf = k.reshape(BH, S, D)
    vf = v.reshape(BH, S, D)

    cost = pl.CostEstimate(
        flops=4 * BH * S * S * D,                 # two matmuls, 2*S*S*D each per head
        transcendentals=BH * S * S,               # exp
        bytes_accessed=(3 * in_bytes + out_bytes) * BH * S * D,
    )

    if force_flash:
        G = None
    elif group_size is not None:
        G = group_size
    else:
        G = _pick_group_size(BH, S, D, in_bytes, out_bytes, mxu_bytes, budget)

    if G is not None:
        # ---------------- single-pass path (S^2 temporaries fit VMEM) ----------------
        assert BH % G == 0, f"group_size {G} must divide B*H = {BH}"
        NG = BH // G
        spec3 = pl.BlockSpec((G, S, D), lambda i: (i, 0, 0))
        # TODO(synk): on v5e, if DMA stalls show up in the mem-bound regime, add
        # pipeline_mode=pl.Buffered(3) on the input specs (re-check VMEM footprint).
        out = pl.pallas_call(
            functools.partial(_attention_kernel, mxu_dtype=mxu_dtype, scale=scale),
            out_shape=jax.ShapeDtypeStruct((BH, S, D), out_dtype),
            grid_spec=pltpu.PrefetchScalarGridSpec(
                num_scalar_prefetch=0,
                grid=(NG,),
                in_specs=[spec3, spec3, spec3],
                out_specs=spec3,
            ),
            compiler_params=pltpu.CompilerParams(
                dimension_semantics=("parallel",),
                vmem_limit_bytes=vmem_limit,
            ),
            cost_estimate=cost,
        )(qf, kf, vf)
    else:
        # -------- KV-tiled online-softmax (flash-style) path for long sequences ------
        Gf, Tk = _pick_flash_tiling(BH, S, D, in_bytes, out_bytes, mxu_bytes, budget)
        if group_size is not None:
            Gf = group_size
        if kv_tile is not None:
            Tk = kv_tile
        assert BH % Gf == 0, f"group_size {Gf} must divide B*H = {BH}"
        assert S % Tk == 0 and (Tk % 8 == 0 or Tk == S), \
            f"kv_tile {Tk} must divide S={S} and be a multiple of 8 (or equal S)"
        NG = BH // Gf
        qo_spec = pl.BlockSpec((Gf, S, D), lambda i, j: (i, 0, 0))
        kv_spec = pl.BlockSpec((Gf, Tk, D), lambda i, j: (i, j, 0))
        out = pl.pallas_call(
            functools.partial(_flash_attention_kernel, mxu_dtype=mxu_dtype, scale=scale),
            out_shape=jax.ShapeDtypeStruct((BH, S, D), out_dtype),
            grid_spec=pltpu.PrefetchScalarGridSpec(
                num_scalar_prefetch=0,
                grid=(NG, S // Tk),
                in_specs=[qo_spec, kv_spec, kv_spec],
                out_specs=qo_spec,
                scratch_shapes=[
                    pltpu.VMEM((Gf, S, 1), jnp.float32),   # running max
                    pltpu.VMEM((Gf, S, 1), jnp.float32),   # running denom
                    pltpu.VMEM((Gf, S, D), jnp.float32),   # running context
                ],
            ),
            compiler_params=pltpu.CompilerParams(
                dimension_semantics=("parallel", "arbitrary"),
                vmem_limit_bytes=vmem_limit,
            ),
            cost_estimate=cost,
        )(qf, kf, vf)

    # (BH, S, D) -> (B, H, S, D): a pure reshape — no wrapper-side transpose, so no
    # extra HBM round trip of the output tensor.
    return out.reshape(B, H, S, D)


# --------------------------------------------------------------------------------------
# Reference + tests
# --------------------------------------------------------------------------------------

def _reference(q, k, v):
    scores = jnp.einsum("bhqd,bhkd->bhqk", q, k) / math.sqrt(D_K)
    attn = jax.nn.softmax(scores, axis=-1)
    return jnp.einsum("bhqk,bhkd->bhqd", attn, v)


if __name__ == "__main__":
    B, H, S, D = 2, 4, 8, D_K
    key = jax.random.PRNGKey(0)
    kq, kk, kv_ = jax.random.split(key, 3)
    q = jax.random.normal(kq, (B, H, S, D), dtype=jnp.float32)
    k = jax.random.normal(kk, (B, H, S, D), dtype=jnp.float32)
    v = jax.random.normal(kv_, (B, H, S, D), dtype=jnp.float32)
    pad_mask = jnp.zeros((B, H, S, S), dtype=jnp.bool_)  # unused (see NOTE at top)

    ref = _reference(q, k, v)

    # 1) Default path: auto head-grouping (>= 2 grid steps) + bf16 MXU inputs.
    out = scale_forward(q, k, v, pad_mask)
    jax.block_until_ready(out)
    assert out.shape == (B, H, S, D) and out.dtype == q.dtype
    assert jnp.allclose(out, ref, atol=5e-2, rtol=5e-2), "bf16-MXU path mismatch"

    # 2) f32-MXU path with an explicit group (exercises a multi-step grid).
    out_f32 = scale_forward(q, k, v, pad_mask, group_size=4, use_bf16_mxu=False)
    jax.block_until_ready(out_f32)
    assert jnp.allclose(out_f32, ref, atol=1e-2, rtol=1e-2), "f32 path mismatch"

    # 3) bf16-in / bf16-out end-to-end (no in-kernel casts, half the HBM traffic).
    qb, kb, vb = (x.astype(jnp.bfloat16) for x in (q, k, v))
    out_bf16 = scale_forward(qb, kb, vb, pad_mask)
    jax.block_until_ready(out_bf16)
    assert out_bf16.dtype == jnp.bfloat16
    assert jnp.allclose(out_bf16.astype(jnp.float32), ref, atol=1e-1, rtol=1e-1), \
        "bf16 end-to-end path mismatch"

    # 4) KV-tiled online-softmax (flash) path, exercised on a longer sequence.
    S2 = 256
    key2 = jax.random.PRNGKey(1)
    kq2, kk2, kv2 = jax.random.split(key2, 3)
    q2 = jax.random.normal(kq2, (B, H, S2, D), dtype=jnp.float32)
    k2 = jax.random.normal(kk2, (B, H, S2, D), dtype=jnp.float32)
    v2 = jax.random.normal(kv2, (B, H, S2, D), dtype=jnp.float32)
    ref2 = _reference(q2, k2, v2)
    out2 = scale_forward(q2, k2, v2, None, force_flash=True, kv_tile=64)
    jax.block_until_ready(out2)
    assert out2.shape == (B, H, S2, D)
    assert jnp.allclose(out2, ref2, atol=5e-2, rtol=5e-2), "flash path mismatch"

    print("KERNEL_OK")
</pallas_src>

<mosaic_0001>
module attributes {stable_mosaic.version = 11 : i64} {
  func.func @_attention_kernel(%arg0: i32, %arg1: memref<4x8x32xf32, #tpu.memory_space<vmem>>, %arg2: memref<4x8x32xf32, #tpu.memory_space<vmem>>, %arg3: memref<4x8x32xf32, #tpu.memory_space<vmem>>, %arg4: memref<4x8x32xf32, #tpu.memory_space<vmem>>) attributes {dimension_semantics = [#tpu.dimension_semantics<parallel>], iteration_bounds = array<i64: 2>, scalar_prefetch = 0 : i64, scratch_operands = 0 : i64, tpu.core_type = #tpu.core_type<tc>, window_params = [{transform_indices = @transform_0, window_bounds = array<i64: 4, 8, 32>}, {transform_indices = @transform_1, window_bounds = array<i64: 4, 8, 32>}, {transform_indices = @transform_2, window_bounds = array<i64: 4, 8, 32>}, {transform_indices = @transform_3, window_bounds = array<i64: 4, 8, 32>}]} {
    %c0 = arith.constant 0 : index
    %c0_0 = arith.constant 0 : index
    %c0_1 = arith.constant 0 : index
    %0 = vector.load %arg1[%c0, %c0_0, %c0_1] : memref<4x8x32xf32, #tpu.memory_space<vmem>>, vector<4x8x32xf32>
    %cst = arith.constant 0.176776692 : f32
    %1 = vector.broadcast %cst : f32 to vector<4x8x32xf32>
    %2 = arith.mulf %0, %1 : vector<4x8x32xf32>
    %c0_2 = arith.constant 0 : index
    %c0_3 = arith.constant 0 : index
    %c0_4 = arith.constant 0 : index
    %3 = vector.load %arg2[%c0_2, %c0_3, %c0_4] : memref<4x8x32xf32, #tpu.memory_space<vmem>>, vector<4x8x32xf32>
    %c0_5 = arith.constant 0 : index
    %c0_6 = arith.constant 0 : index
    %c0_7 = arith.constant 0 : index
    %4 = vector.load %arg3[%c0_5, %c0_6, %c0_7] : memref<4x8x32xf32, #tpu.memory_space<vmem>>, vector<4x8x32xf32>
    %5 = arith.truncf %2 : vector<4x8x32xf32> to vector<4x8x32xbf16>
    %6 = arith.truncf %3 : vector<4x8x32xf32> to vector<4x8x32xbf16>
    %7 = arith.truncf %4 : vector<4x8x32xf32> to vector<4x8x32xbf16>
    "tpu.trace_start"() <{level = 10 : i32, message = "gqd,gkd->gqk"}> : () -> ()
    %cst_8 = arith.constant dense<0.000000e+00> : vector<4x8x8xf32>
    %8 = tpu.matmul %5, %6, %cst_8 {dimension_numbers = #tpu.dot_dimension_numbers<[2], [2], [1], [1], [0, 0, 0, 1, 1, 1], [0], [0]>} : vector<4x8x32xbf16>, vector<4x8x32xbf16>, vector<4x8x8xf32> -> vector<4x8x8xf32>
    "tpu.trace_stop"() : () -> ()
    %cst_9 = arith.constant dense<0xFF800000> : vector<4x8xf32>
    %9 = vector.multi_reduction <maximumf>, %8, %cst_9 [2] : vector<4x8x8xf32> to vector<4x8xf32>
    %10 = vector.shape_cast %9 : vector<4x8xf32> to vector<4x8x1xf32>
    %11 = vector.broadcast %10 : vector<4x8x1xf32> to vector<4x8x8xf32>
    %12 = arith.subf %8, %11 : vector<4x8x8xf32>
    %13 = math.exp %12 : vector<4x8x8xf32>
    %cst_10 = arith.constant dense<0.000000e+00> : vector<4x8xf32>
    %14 = vector.multi_reduction <add>, %13, %cst_10 [2] : vector<4x8x8xf32> to vector<4x8xf32>
    %15 = vector.shape_cast %14 : vector<4x8xf32> to vector<4x8x1xf32>
    %16 = arith.truncf %13 : vector<4x8x8xf32> to vector<4x8x8xbf16>
    "tpu.trace_start"() <{level = 10 : i32, message = "gqk,gkd->gqd"}> : () -> ()
    %cst_11 = arith.constant dense<0.000000e+00> : vector<4x8x32xf32>
    %17 = tpu.matmul %16, %7, %cst_11 {dimension_numbers = #tpu.dot_dimension_numbers<[2], [1], [1], [2], [0, 0, 0, 1, 1, 2], [0], [0]>} : vector<4x8x8xbf16>, vector<4x8x32xbf16>, vector<4x8x32xf32> -> vector<4x8x32xf32>
    "tpu.trace_stop"() : () -> ()
    %18 = tpu.reciprocal %15 {approx = true} : vector<4x8x1xf32> -> vector<4x8x1xf32>
    %19 = vector.broadcast %18 : vector<4x8x1xf32> to vector<4x8x32xf32>
    %20 = arith.mulf %17, %19 : vector<4x8x32xf32>
    %c0_12 = arith.constant 0 : index
    %c0_13 = arith.constant 0 : index
    %c0_14 = arith.constant 0 : index
    %21 = vector.load %arg4[%c0_12, %c0_13, %c0_14] : memref<4x8x32xf32, #tpu.memory_space<vmem>>, vector<4x8x32xf32>
    tpu.vector_store %arg4[%c0_12, %c0_13, %c0_14], %20 {strides = array<i32>} : memref<4x8x32xf32, #tpu.memory_space<vmem>>, vector<4x8x32xf32>,
    return
  }
  func.func @transform_0(%arg0: i32) -> (i32, i32, i32) {
    %c0_i32 = arith.constant 0 : i32
    %c0_i32_0 = arith.constant 0 : i32
    %c0_i32_1 = arith.constant 0 : i32
    return %arg0, %c0_i32, %c0_i32_0 : i32, i32, i32
  }
  func.func @transform_1(%arg0: i32) -> (i32, i32, i32) {
    %c0_i32 = arith.constant 0 : i32
    %c0_i32_0 = arith.constant 0 : i32
    %c0_i32_1 = arith.constant 0 : i32
    return %arg0, %c0_i32, %c0_i32_0 : i32, i32, i32
  }
  func.func @transform_2(%arg0: i32) -> (i32, i32, i32) {
    %c0_i32 = arith.constant 0 : i32
    %c0_i32_0 = arith.constant 0 : i32
    %c0_i32_1 = arith.constant 0 : i32
    return %arg0, %c0_i32, %c0_i32_0 : i32, i32, i32
  }
  func.func @transform_3(%arg0: i32) -> (i32, i32, i32) {
    %c0_i32 = arith.constant 0 : i32
    %c0_i32_0 = arith.constant 0 : i32
    %c0_i32_1 = arith.constant 0 : i32
    return %arg0, %c0_i32, %c0_i32_0 : i32, i32, i32
  }
}

</mosaic_0001>

<bundles_post_ra>
// kernel: tpu_custom_call.1
= control target key start
LH: loop header
LB: loop body
LE: loop exit
PB: predicated region body
PF: predicated region fallthrough
CT: control target
= control target key end

     0   :  { %s1535_s0 = inlined_call_operand.hbm [shape: f32[8,8,32], index: 0, kind: input, shape index: {}]   ;;  %s1536_s1 = inlined_call_operand.hbm [shape: f32[8,8,32], index: 1, kind: input, shape index: {}]   ;;  %s1537_s2 = inlined_call_operand.hbm [shape: f32[8,8,32], index: 2, kind: input, shape index: {}]   ;;  %s1538_s3 = inlined_call_operand.hbm [shape: f32[8,8,32], index: 3, kind: output, shape index: {}]  }
   0x1   :  { %1545 = sst [smem:[#allocation12_spill]] %s1535_s0 }
   0x2   :  { %8 = vsyncpa [#allocation3], 0 }
   0x3   :  { %10 = vsyncpa [#allocation3 + $0x1], 0 }
   0x4   :  { %11 = vsyncpa [#allocation6], 0 }
   0x5   :  { %13 = vsyncpa [#allocation6 + $0x1], 0 }
   0x6   :  { %14 = vsyncpa [#allocation4], 0 }
   0x7   :  { %16 = vsyncpa [#allocation4 + $0x1], 0  ;;  %s1220_s12 = smov 0   ;;  %s1222_s13 = smov 0  }
   0x8   :  { %s1224_s14 = smov 0   ;;  %s1226_s15 = smov 0  }
   0x9 LB: > { %s1241_s16 = sadd.s32 4294967295, %s1188_s15   ;;  %s852_s17 = sadd.s32 4294967294, %s1188_s15   ;;  %s1188_s15 = sphi %s1226_s15, %s1564_s15   ;;  %s1184_s14 = sphi %s1224_s14, %s1563_s14   ;;  %s1180_s13 = sphi %s1222_s13, %s1562_s13   ;;  %s1176_s12 = sphi %s1220_s12, %s1561_s12  }
   0xa   : > { %s1245_s18 = sadd.s32 1, %s1188_s15   ;;  %s29_s19 = sadd.s32 1, %s1184_s14 }
   0xb   : > { %s26_s20 = ssub.s32 %s1188_s15, %s1245_s18  ;;  %p36_p0 = scmp.ne.s32.totalorder %s1184_s14, %s1180_s13 }
   0xc   : > { %p27_p1 = scmp.eq.s32.totalorder %s26_s20, 0  ;;  %p37_p2 = scmp.eq.s32.totalorder %s1188_s15, 0 }
   0xd   : > { %p42_p3 = scmp.ne.s32.totalorder %s1180_s13, %s1176_s12  ;;  %p43_p4 = scmp.eq.s32.totalorder %s1241_s16, 0 }
   0xe   : > { %s1257_s21 = scalar_select %p27_p1, %s1184_s14, %s29_s19  }
   0xf   : > { %p38_p5 = por %p37_p2, %p36_p0  ;;  %p1259_p6 = por %p43_p4, %p42_p3 }
  0x10   : > { %p118_p7 = scmp.eq.s32.totalorder %s1241_s16, 1  ;;  %p124_p8 = scmp.eq.s32.totalorder %s852_s17, 1 }
  0x11   : > { %s1546_s22 = scalar_select %p1259_p6, 1, 0 }
  0x12   : > { %p972_p10 = scmp.lt.s32.totalorder %s1188_s15, 2  ;;  %p1266_p11 = por %p118_p7, %p36_p0 }
  0x13   : > { %p1270_p12 = por %p124_p8, %p42_p3  ;;  %s144_s25 = sand.u32 1, %s1184_s14  }
  0x14   : > { %s1547_s23 = scalar_select %p1266_p11, 1, 0 }
  0x15   : > { %s1548_s24 = scalar_select %p1270_p12, 1, 0 }
  0x16   : > { %s1276_s26 = sshll.u32 %s1188_s15, 9  ;;  %s1280_s27 = sshll.u32 %s144_s25, 5 }
  0x17   : > { %p1282_p13 = pnand %p972_p10, %p38_p5  ;;  %s165_s29 = sand.u32 1, %s1188_s15  }
  0x18   : > { %s1291_s5 = scalar_lea.hbm %s1536_s1, %s1276_s26  ;;  %s169_s6 = scalar_lea.vmem [#allocation5], %s1280_s27 }
  0x19   : > { %s176_s7 = sshll.u32 %s169_s6, 4  ;;  %s1297_s8 = scalar_lea.sflag [#allocation6], %s165_s29  ;;  %s1294_s7 = int_to_ptr.vmem [resolvable:$true] %s176_s7 }
  0x1a   : > { %s1028_s9 = scalar_lea.hbm %s1291_s5, 512  ;;  %p1303_p2 = pneg %p1282_p13 }
  0x1b   : > { %p1029_p1 = scmp.ne.s32.totalorder %s1291_s5, %s1028_s9  ;;  %s1033_s19 = scalar_lea.hbm %s1536_s1, 1024 }
  0x1c   : > { %p1034_p5 = scmp.lt.u32.totalorder %s1291_s5, %s1536_s1  ;;  %p1035_p7 = scmp.lt.u32.totalorder %s1033_s19, %s1028_s9 }
  0x1d   : > { %p1031_p3 = pnand %p1303_p2, %p1029_p1  ;;  %p1037_p10 = scmp.lt.u32.totalorder %s1028_s9, %s1291_s5 }
  0x1e   : > { %p1036_p8 = por %p1035_p7, %p1034_p5 }
  0x1f   : > { %p1032_p4 = pneg %p1031_p3 }
  0x20   : > { %p1038_p9 = por %p1037_p10, %p1036_p8 }
  0x22   : > { %p1039_p0 = pnand %p1038_p9, %p1032_p4 }
  0x24   : > { %1042 = shalt.err (!%p1039_p0)
}
  0x25   : > { %s1043_s29 = scalar_lea.vmem %s1294_s7, 512  ;;  %s1190_s4 = smov [#allocation5]  }
  0x26   : > { %p1044_p1 = scmp.ne.s32.totalorder %s1294_s7, %s1043_s29  ;;  %s1048_s6 = sshll.u32 %s1190_s4, 4  ;;  %s1049_s6 = int_to_ptr.vmem [resolvable:$false] %s1048_s6 }
  0x27   : > { %s1050_s11 = scalar_lea.vmem %s1049_s6, 1024  ;;  %p1051_p11 = scmp.lt.s32.totalorder %s1294_s7, %s1049_s6 }
  0x28   : > { %p1046_p3 = pnand %p1044_p1, %p1303_p2  ;;  %p1052_p6 = scmp.lt.s32.totalorder %s1050_s11, %s1043_s29 }
  0x2a   : > { %p1047_p12 = pneg %p1046_p3  ;;  %p1053_p5 = por %p1052_p6, %p1051_p11 }
  0x2c   : > { %p1054_p7 = pnand %p1053_p5, %p1047_p12 }
  0x2e   : > { %1057 = shalt.err (!%p1054_p7)
}
  0x2f   : > { %s1541_s9 = smov 128   ;;  %s1543_s17 = smov 8  }
  0x30   : > { %964 = dma.hbm_to_vmem [thread:$0]  (!%p1282_p13), %s1291_s5, 512, %s1294_s7, %s1297_s8, %s1541_s9, %s1541_s9, %s1543_s17  }
  0x31   : > { %p205_p6 = scmp.lt.s32.totalorder %s1188_s15, 3  ;;  %s1551_s0 = sld [smem:[#allocation12_spill]] }
  0x32   : > { %p1552_p9 = scmp.ge.s32.totalorder %s1188_s15, 1  ;;  %s148_s4 = scalar_lea.vmem [#allocation2], %s1280_s27 }
  0x33   : > { %s155_s6 = sshll.u32 %s148_s4, 4  ;;  %s1348_s5 = scalar_lea.sflag [#allocation3], %s144_s25  ;;  %s1344_s6 = int_to_ptr.vmem [resolvable:$true] %s155_s6 }
  0x34   : > { %p1339_p11 = pnand %p1552_p9, %p205_p6 }
  0x36   : > { %s1553_s29 = scalar_select %p1339_p11, 1, 0 }
  0x37   : > { %s1335_s30 = scalar_lea.hbm %s1551_s0, %s1276_s26  ;;  %s1063_s20 = scalar_lea.hbm %s1551_s0, 1024 }
  0x38   : > { %s1058_s7 = scalar_lea.hbm %s1335_s30, 512  ;;  %p1064_p8 = scmp.lt.u32.totalorder %s1335_s30, %s1551_s0 }
  0x39   : > { %p1059_p12 = scmp.ne.s32.totalorder %s1335_s30, %s1058_s7  ;;  %p1065_p10 = scmp.lt.u32.totalorder %s1063_s20, %s1058_s7 }
  0x3a   : > { %p1067_p3 = scmp.lt.u32.totalorder %s1058_s7, %s1335_s30 }
  0x3b   : > { %p1061_p0 = pnand %p1059_p12, %p1303_p2  ;;  %p1066_p1 = por %p1065_p10, %p1064_p8 }
  0x3d   : > { %p1062_p4 = pneg %p1061_p0  ;;  %p1068_p5 = por %p1067_p3, %p1066_p1 }
  0x3f   : > { %p1069_p7 = pnand %p1068_p5, %p1062_p4 }
  0x41   : > { %1072 = shalt.err (!%p1069_p7)
}
  0x42   : > { %s1073_s25 = scalar_lea.vmem %s1344_s6, 512  ;;  %s1193_s4 = smov [#allocation2]  }
  0x43   : > { %p1074_p6 = scmp.ne.s32.totalorder %s1344_s6, %s1073_s25  ;;  %s1078_s11 = sshll.u32 %s1193_s4, 4  ;;  %s1079_s11 = int_to_ptr.vmem [resolvable:$false] %s1078_s11 }
  0x44   : > { %s1080_s9 = scalar_lea.vmem %s1079_s11, 1024  ;;  %p1081_p0 = scmp.lt.s32.totalorder %s1344_s6, %s1079_s11 }
  0x45   : > { %p1076_p9 = pnand %p1074_p6, %p1303_p2  ;;  %p1082_p11 = scmp.lt.s32.totalorder %s1080_s9, %s1073_s25 }
  0x47   : > { %p1077_p12 = pneg %p1076_p9  ;;  %p1083_p8 = por %p1082_p11, %p1081_p0 }
  0x49   : > { %p1084_p10 = pnand %p1083_p8, %p1077_p12 }
  0x4b   : > { %1087 = shalt.err (!%p1084_p10)
}
  0x4c   : > { %s1554_s17 = smov 8   ;;  %s1555_s7 = smov 128  }
  0x4d   : > { %961 = dma.hbm_to_vmem [thread:$0]  (!%p1282_p13), %s1335_s30, 512, %s1344_s6, %s1348_s5, %s1555_s7, %s1555_s7, %s1554_s17  }
  0x4e   : > { %s1379_s4 = scalar_lea.hbm %s1537_s2, %s1276_s26  ;;  %s190_s25 = scalar_lea.vmem [#allocation7], %s1280_s27 }
  0x4f   : > { %s197_s11 = sshll.u32 %s190_s25, 4  ;;  %s1088_s9 = scalar_lea.hbm %s1379_s4, 512  ;;  %s1382_s11 = int_to_ptr.vmem [resolvable:$true] %s197_s11 }
  0x50   : > { %p1089_p11 = scmp.ne.s32.totalorder %s1379_s4, %s1088_s9  ;;  %s1093_s6 = scalar_lea.hbm %s1537_s2, 1024 }
  0x51   : > { %p1094_p3 = scmp.lt.u32.totalorder %s1379_s4, %s1537_s2  ;;  %p1095_p5 = scmp.lt.u32.totalorder %s1093_s6, %s1088_s9 }
  0x52   : > { %p1091_p4 = pnand %p1089_p11, %p1303_p2  ;;  %p1097_p6 = scmp.lt.u32.totalorder %s1088_s9, %s1379_s4 }
  0x53   : > { %p1096_p7 = por %p1095_p5, %p1094_p3 }
  0x54   : > { %p1092_p1 = pneg %p1091_p4 }
  0x55   : > { %p1098_p9 = por %p1097_p6, %p1096_p7 }
  0x57   : > { %p1099_p12 = pnand %p1098_p9, %p1092_p1 }
  0x59   : > { %1102 = shalt.err (!%p1099_p12)
}
  0x5a   : > { %s1103_s27 = scalar_lea.vmem %s1382_s11, 512  ;;  %s1194_s0 = smov [#allocation7]  }
  0x5b   : > { %p1104_p0 = scmp.ne.s32.totalorder %s1382_s11, %s1103_s27  ;;  %s1108_s19 = sshll.u32 %s1194_s0, 4  ;;  %s1109_s19 = int_to_ptr.vmem [resolvable:$false] %s1108_s19 }
  0x5c   : > { %s1110_s20 = scalar_lea.vmem %s1109_s19, 1024  ;;  %p1111_p11 = scmp.lt.s32.totalorder %s1382_s11, %s1109_s19 }
  0x5d   : > { %p1106_p8 = pnand %p1104_p0, %p1303_p2  ;;  %p1112_p4 = scmp.lt.s32.totalorder %s1110_s20, %s1103_s27 }
  0x5f   : > { %p1107_p10 = pneg %p1106_p8  ;;  %p1113_p3 = por %p1112_p4, %p1111_p11 }
  0x61   : > { %p1114_p5 = pnand %p1113_p3, %p1107_p10 }
  0x63   : > { %1117 = shalt.err (!%p1114_p5)
}
  0x64   : > { %967 = dma.hbm_to_vmem [thread:$0]  (!%p1282_p13), %s1379_s4, 512, %s1382_s11, %s1297_s8, %s1555_s7, %s1555_s7, %s1554_s17  }
  0x65   : > { %p1556_p2 = scmp.ne.s32.totalorder %s1553_s29, 0 }
  0x66   : > { %s1412_s10 = sand.u32 (!%p1556_p2), 1, %s1180_s13   ;;  %p1557_p1 = scmp.ne.s32.totalorder (!%p1556_p2), %s1546_s22, 0 }
  0x67   : > { %209 = sbr.rel (%p1556_p2) target bundleno = 738 (0x2e2), region = 32  ;;  %s1415_s25 = sshll.u32 (!%p1556_p2), %s1412_s10, 5 }
  0x68   : > { %s212_s28 = scalar_lea.sflag (!%p1556_p2), [#allocation3], %s1412_s10  ;;  %s1419_s9 = scalar_lea.vmem (!%p1556_p2), [#allocation2], %s1415_s25 }
  0x6e   : > { %1163 = dma.done.wait (%p1557_p1), %s212_s28, 512  }
  0x6f   : > { %1165 = vsyncadd (%p1557_p1), %s212_s28, 4294966784  ;;  %s220_s8 = sand.u32 1, %s1241_s16   ;;  %s224_s17 = scalar_lea.vmem [#allocation5], %s1415_s25 }
  0x70   : > { %s221_s29 = scalar_lea.sflag [#allocation6], %s220_s8 }
  0x71   : > { %1167 = dma.done.wait (%p1557_p1), %s221_s29, 1024  }
  0x72   : > { %1169 = vsyncadd (%p1557_p1), %s221_s29, 4294966272  ;;  %v1195_v0 = vmov 0.0   ;;  %vm1196_vm0 = vmmov 0   ;;  %v279_v1 = vld [vmem:[%s224_s17] sm:$0xff]  ;;  %vm299_vm1 = vcmask 261120   ;;  %v280_v2 = vld [vmem:[%s224_s17 + $0x8] sm:$0xff] }
  0x73   : > { %902 = vmatprep.subr.bf16.mxu0 %v1195_v0  ;;  %908 = vmatprep.subr.bf16.mxu1 %v1195_v0  ;;  %v271_v3 = vld [vmem:[%s1419_s9] sm:$0xff]  ;;  %v291_v4 = vpack.c.bf16 %v279_v1, %v279_v1  ;;  %v292_v5 = vpack.c.bf16 %v280_v2, %v280_v2  ;;  %v272_v6 = vld [vmem:[%s1419_s9 + $0x8] sm:$0xff]  ;;  %v281_v7 = vld [vmem:[%s224_s17 + $0x10] sm:$0xff]  ;;  %vm484_vm2 = vcmask 64512   ;;  %s233_s22 = scalar_lea.vmem [#allocation7], %s1415_s25  ;;  %vm528_vm3 = vcmask 1043456  }
  0x74   : > { %904 = vmatprep.mubr.msk.bf16.mxu0 %vm1196_vm0, %v1195_v0  ;;  %910 = vmatprep.mubr.msk.bf16.mxu1 %vm1196_vm0, %v1195_v0  ;;  %v282_v8 = vld [vmem:[%s224_s17 + $0x18] sm:$0xff]  ;;  %v275_v11 = vmul.f32 0.17677669, %v271_v3  ;;  %v276_v12 = vmul.f32 0.17677669, %v272_v6  ;;  %v293_v13 = vpack.c.bf16 %v281_v7, %v281_v7  ;;  %v273_v17 = vld [vmem:[%s1419_s9 + $0x10] sm:$0xff] }
  0x75   : > { %v304_v9 = vsel %vm299_vm1, %v291_v4, 0  ;;  %v350_v10 = vsel %vm299_vm1, %v292_v5, 0  ;;  %v294_v14 = vpack.c.bf16 %v282_v8, %v282_v8  ;;  %v274_v18 = vld [vmem:[%s1419_s9 + $0x18] sm:$0xff]  ;;  %v277_v21 = vmul.f32 0.17677669, %v273_v17  ;;  %v283_v45 = vld [vmem:[%s233_s22] sm:$0xff] }
  0x76   : > { %903 = vmatpush3.bf16.xpose.msra.mxu0 %v304_v9  ;;  %909 = vmatpush3.bf16.xpose.msra.mxu1 %v350_v10  ;;  %v287_v15 = vpack.c.bf16 %v275_v11, %v275_v11  ;;  %v288_v16 = vpack.c.bf16 %v276_v12, %v276_v12  ;;  %v396_v19 = vsel %vm299_vm1, %v293_v13, 0  ;;  %v278_v22 = vmul.f32 0.17677669, %v274_v18  ;;  %v284_v48 = vld [vmem:[%s233_s22 + $0x8] sm:$0xff]  ;;  %v285_v51 = vld [vmem:[%s233_s22 + $0x10] sm:$0xff]  ;;  %v286_v54 = vld [vmem:[%s233_s22 + $0x18] sm:$0xff] }
  0x77   : > { %914 = vmatprep.subr.bf16.mxu0 %v1195_v0  ;;  %920 = vmatprep.subr.bf16.mxu1 %v1195_v0  ;;  %v442_v20 = vsel %vm299_vm1, %v294_v14, 0  ;;  %v289_v23 = vpack.c.bf16 %v277_v21, %v277_v21  ;;  %v295_v46 = vpack.c.bf16 %v283_v45, %v283_v45  ;;  %v296_v49 = vpack.c.bf16 %v284_v48, %v284_v48  ;;  %s265_s7 = scalar_lea.vmem [#allocation8], %s1415_s25  ;;  %s885_s11 = sshll.u32 %s1241_s16, 9 }
  0x78   : > { %v290_v24 = vpack.c.bf16 %v278_v22, %v278_v22  ;;  %v297_v52 = vpack.c.bf16 %v285_v51, %v285_v51  ;;  %v298_v55 = vpack.c.bf16 %v286_v54, %v286_v54  ;;  %s736_s4 = sshll.u32 %s265_s7, 4  ;;  %s1490_s5 = scalar_lea.hbm %s1538_s3, %s885_s11  ;;  %s1484_s4 = int_to_ptr.vmem [resolvable:$true] %s736_s4 }
  0x79   : > { %v530_v47 = vsel %vm528_vm3, %v295_v46, 0  ;;  %v576_v50 = vsel %vm528_vm3, %v296_v49, 0  ;;  %s723_s16 = scalar_lea.sflag [#allocation4], %s1412_s10  ;;  %s1118_s26 = scalar_lea.vmem %s1484_s4, 512 }
  0x7a   : > { %v622_v53 = vsel %vm528_vm3, %v297_v52, 0  ;;  %v668_v56 = vsel %vm528_vm3, %v298_v55, 0  ;;  %p1119_p13 = scmp.ne.s32.totalorder %s1484_s4, %s1118_s26  ;;  %p1558_p7 = scmp.ne.s32.totalorder %s1547_s23, 0 }
  0x7b   : > { %s1197_s27 = smov [#allocation8]  }
  0x7c   : > { %p1120_p6 = pnand %p1119_p13, %p1558_p7  ;;  %s1122_s0 = sshll.u32 %s1197_s27, 4  ;;  %s1123_s0 = int_to_ptr.vmem [resolvable:$false] %s1122_s0 }
  0x7d   : > { %905 = vmatmul.mubr.msk.bf16.vlgmr.msra.gmra.mrb[0].mxu0 %vm299_vm1, %v287_v15  ;;  %911 = vmatmul.mubr.msk.bf16.vlgmr.msra.gmra.mrb[0].mxu1 %vm299_vm1, %v288_v16  ;;  %s1124_s19 = scalar_lea.vmem %s1123_s0, 1024  ;;  %p1125_p12 = scmp.lt.s32.totalorder %s1484_s4, %s1123_s0 }
  0x7e   : > { %915 = vmatpush3.bf16.xpose.msra.mxu0 %v396_v19  ;;  %921 = vmatpush3.bf16.xpose.msra.mxu1 %v442_v20  ;;  %p1121_p9 = pneg %p1120_p6  ;;  %p1126_p0 = scmp.lt.s32.totalorder %s1124_s19, %s1118_s26 }
  0x7f   : > { %916 = vmatprep.mubr.msk.bf16.mxu0 %vm1196_vm0, %v1195_v0  ;;  %922 = vmatprep.mubr.msk.bf16.mxu1 %vm1196_vm0, %v1195_v0 }
  0x80   : > { %926 = vmatprep.subr.bf16.mxu0 %v1195_v0  ;;  %932 = vmatprep.subr.bf16.mxu1 %v1195_v0  ;;  %p1127_p8 = por %p1126_p0, %p1125_p12 }
  0x82   : > { %p1128_p10 = pnand %p1127_p8, %p1121_p9 }
  0x85   : > { %917 = vmatmul.mubr.msk.bf16.vlgmr.msra.gmra.mrb[4].mxu0 %vm299_vm1, %v289_v23  ;;  %923 = vmatmul.mubr.msk.bf16.vlgmr.msra.gmra.mrb[4].mxu1 %vm299_vm1, %v290_v24 }
  0x86   : > { %928 = vmatprep.mubr.msk.bf16.mxu0 %vm1196_vm0, %v1195_v0  ;;  %934 = vmatprep.mubr.msk.bf16.mxu1 %vm1196_vm0, %v1195_v0 }
  0x87   : > { %927 = vmatpush3.bf16.msra.mxu0 %v530_v47  ;;  %933 = vmatpush3.bf16.msra.mxu1 %v576_v50 }
  0x88   : > { %938 = vmatprep.subr.bf16.mxu0 %v1195_v0  ;;  %944 = vmatprep.subr.bf16.mxu1 %v1195_v0 }
 0x150   : > { %v340_v25 = vpop.f32.mrb[0].mxu0  ;;  %v386_v26 = vpop.f32.mrb[0].mxu1 }
 0x151   : > { %v906_v27 = vpop.f32.mrb[1].mxu0  ;;  %v485_v28 = vsel %vm484_vm2, %v340_v25, -inf  ;;  %v912_v29 = vpop.f32.mrb[1].mxu1  ;;  %v488_v34 = vsel %vm484_vm2, %v386_v26, -inf }
 0x152   : > { %486 = vmax.xlane.f32.xlu0 %v485_v28  ;;  %v343_v30 = vpop.f32.mrb[2].mxu0  ;;  %v389_v31 = vpop.f32.mrb[2].mxu1 }
 0x153   : > { %v907_v32 = vpop.f32.mrb[3].mxu0  ;;  %v913_v33 = vpop.f32.mrb[3].mxu1 }
 0x156   : > { %489 = vmax.xlane.f32.xlu0 %v488_v34 }
 0x158   : > { %v432_v35 = vpop.f32.mrb[4].mxu0  ;;  %v478_v36 = vpop.f32.mrb[4].mxu1 }
 0x159   : > { %v918_v37 = vpop.f32.mrb[5].mxu0  ;;  %v491_v38 = vsel %vm484_vm2, %v432_v35, -inf  ;;  %v924_v39 = vpop.f32.mrb[5].mxu1  ;;  %v494_v44 = vsel %vm484_vm2, %v478_v36, -inf }
 0x15a   : > { %492 = vmax.xlane.f32.xlu1 %v491_v38  ;;  %v435_v40 = vpop.f32.mrb[6].mxu0  ;;  %v481_v41 = vpop.f32.mrb[6].mxu1 }
 0x15b   : > { %v919_v42 = vpop.f32.mrb[7].mxu0  ;;  %v925_v43 = vpop.f32.mrb[7].mxu1 }
 0x15e   : > { %495 = vmax.xlane.f32.xlu1 %v494_v44 }
 0x1df   : > { %v487_v57 = vpop.xlane.xlu0 %486 }
 0x1e0   : > { %v497_v58 = vsub.f32 %v340_v25, %v487_v57 }
 0x1e2   : > { %v501_v59 = vmul.f32 1.442695, %v497_v58 }
 0x1e3   : > { %v490_v60 = vpop.xlane.xlu0 %489 }
 0x1e4   : > { %1012 = vpow2.f32 %v501_v59  ;;  %v498_v61 = vsub.f32 %v386_v26, %v490_v60 }
 0x1e6   : > { %v503_v62 = vmul.f32 1.442695, %v498_v61 }
 0x1e7   : > { %v493_v63 = vpop.xlane.xlu1 %492 }
 0x1e8   : > { %1014 = vpow2.f32 %v503_v62  ;;  %v499_v1 = vsub.f32 %v432_v35, %v493_v63 }
 0x1ea   : > { %v505_v2 = vmul.f32 1.442695, %v499_v1 }
 0x1eb   : > { %v496_v3 = vpop.xlane.xlu1 %495 }
 0x1ec   : > { %1016 = vpow2.f32 %v505_v2  ;;  %v500_v4 = vsub.f32 %v478_v36, %v496_v3 }
 0x1ee   : > { %v1013_v5 = vpop.eup %1012  ;;  %v507_v6 = vmul.f32 1.442695, %v500_v4 }
 0x1ef   : > { %v509_v7 = vsel %vm484_vm2, %v1013_v5, 0.0  ;;  %v521_v8 = vpack.c.bf16 %v1013_v5, %v1013_v5 }
 0x1f0   : > { %1018 = vpow2.f32 %v507_v6  ;;  %510 = vadd.xlane.f32.xlu0 %v509_v7 }
 0x1f1   : > { %929 = vmatmul.mubr.msk.bf16.vlgmr.msra.gmra.mrb[8].mxu0 %vm484_vm2, %v521_v8 }
 0x1f2   : > { %v1015_v9 = vpop.eup %1014  ;;  %939 = vmatpush3.bf16.msra.mxu0 %v622_v53  ;;  %940 = vmatprep.mubr.msk.bf16.mxu0 %vm1196_vm0, %v1195_v0 }
 0x1f3   : > { %v512_v10 = vsel %vm484_vm2, %v1015_v9, 0.0  ;;  %v522_v11 = vpack.c.bf16 %v1015_v9, %v1015_v9 }
 0x1f4   : > { %513 = vadd.xlane.f32.xlu1 %v512_v10 }
 0x1f5   : > { %935 = vmatmul.mubr.msk.bf16.vlgmr.msra.gmra.mrb[8].mxu1 %vm484_vm2, %v522_v11 }
 0x1f6   : > { %v1017_v12 = vpop.eup %1016  ;;  %945 = vmatpush3.bf16.msra.mxu1 %v668_v56  ;;  %946 = vmatprep.mubr.msk.bf16.mxu1 %vm1196_vm0, %v1195_v0 }
 0x1f7   : > { %v515_v13 = vsel %vm484_vm2, %v1017_v12, 0.0  ;;  %v523_v14 = vpack.c.bf16 %v1017_v12, %v1017_v12 }
 0x1f8   : > { %516 = vadd.xlane.f32.xlu0 %v515_v13 }
 0x1f9   : > { %941 = vmatmul.mubr.msk.bf16.vlgmr.msra.gmra.mrb[12].mxu0 %vm484_vm2, %v523_v14 }
 0x1fa   : > { %v1019_v15 = vpop.eup %1018 }
 0x1fb   : > { %v518_v16 = vsel %vm484_vm2, %v1019_v15, 0.0  ;;  %v524_v17 = vpack.c.bf16 %v1019_v15, %v1019_v15 }
 0x1fc   : > { %519 = vadd.xlane.f32.xlu1 %v518_v16 }
 0x1fd   : > { %947 = vmatmul.mubr.msk.bf16.vlgmr.msra.gmra.mrb[12].mxu1 %vm484_vm2, %v524_v17 }
 0x27d   : > { %v511_v18 = vpop.xlane.xlu0 %510 }
 0x27e   : > { %1020 = vrcp.f32 %v511_v18 }
 0x281   : > { %v514_v19 = vpop.xlane.xlu1 %513 }
 0x282   : > { %1022 = vrcp.f32 %v514_v19 }
 0x285   : > { %v517_v20 = vpop.xlane.xlu0 %516 }
 0x286   : > { %1024 = vrcp.f32 %v517_v20 }
 0x288   : > { %v1021_v21 = vpop.eup %1020 }
 0x289   : > { %v520_v0 = vpop.xlane.xlu1 %519 }
 0x28a   : > { %1026 = vrcp.f32 %v520_v0 }
 0x28c   : > { %v1023_v27 = vpop.eup %1022 }
 0x290   : > { %v1025_v33 = vpop.eup %1024 }
 0x294   : > { %v1027_v39 = vpop.eup %1026 }
 0x2c4   : > { %v566_v22 = vpop.f32.mrb[8].mxu0 }
 0x2c5   : > { %v714_v23 = vmul.f32 %v1021_v21, %v566_v22  ;;  %v930_v24 = vpop.f32.mrb[9].mxu0 }
 0x2c6   : > { %v569_v25 = vpop.f32.mrb[10].mxu0 }
 0x2c7   : > { %718 = vst.msk [vmem:[%s265_s7] sm:$0xff] %vm299_vm1, %v714_v23  ;;  %v931_v26 = vpop.f32.mrb[11].mxu0 }
 0x2c8   : > { %v612_v28 = vpop.f32.mrb[8].mxu1 }
 0x2c9   : > { %v715_v29 = vmul.f32 %v1023_v27, %v612_v28  ;;  %v936_v30 = vpop.f32.mrb[9].mxu1 }
 0x2ca   : > { %v615_v31 = vpop.f32.mrb[10].mxu1 }
 0x2cb   : > { %719 = vst.msk [vmem:[%s265_s7 + $0x8] sm:$0xff] %vm299_vm1, %v715_v29  ;;  %v937_v32 = vpop.f32.mrb[11].mxu1 }
 0x2cc   : > { %v658_v34 = vpop.f32.mrb[12].mxu0 }
 0x2cd   : > { %v716_v35 = vmul.f32 %v1025_v33, %v658_v34  ;;  %v942_v36 = vpop.f32.mrb[13].mxu0 }
 0x2ce   : > { %v661_v37 = vpop.f32.mrb[14].mxu0 }
 0x2cf   : > { %720 = vst.msk [vmem:[%s265_s7 + $0x10] sm:$0xff] %vm299_vm1, %v716_v35  ;;  %v943_v38 = vpop.f32.mrb[15].mxu0 }
 0x2d0   : > { %v704_v40 = vpop.f32.mrb[12].mxu1 }
 0x2d1   : > { %v717_v41 = vmul.f32 %v1027_v39, %v704_v40  ;;  %v948_v42 = vpop.f32.mrb[13].mxu1 }
 0x2d2   : > { %v707_v43 = vpop.f32.mrb[14].mxu1 }
 0x2d3   : > { %721 = vst.msk [vmem:[%s265_s7 + $0x18] sm:$0xff] %vm299_vm1, %v717_v41  ;;  %v949_v44 = vpop.f32.mrb[15].mxu1 }
 0x2d4   : > { %1131 = shalt.err (!%p1128_p10)
}
 0x2d5   : > { %s1132_s20 = scalar_lea.hbm %s1490_s5, 512  ;;  %s1136_s9 = scalar_lea.hbm %s1538_s3, 1024 }
 0x2d6   : > { %p1133_p11 = scmp.ne.s32.totalorder %s1490_s5, %s1132_s20  ;;  %p1137_p5 = scmp.lt.u32.totalorder %s1490_s5, %s1538_s3 }
 0x2d7   : > { %p1138_p2 = scmp.lt.u32.totalorder %s1136_s9, %s1132_s20  ;;  %p1140_p13 = scmp.lt.u32.totalorder %s1132_s20, %s1490_s5 }
 0x2d8   : > { %p1134_p4 = pnand %p1133_p11, %p1558_p7 }
 0x2d9   : > { %p1139_p1 = por %p1138_p2, %p1137_p5 }
 0x2da   : > { %p1135_p3 = pneg %p1134_p4 }
 0x2db   : > { %p1141_p6 = por %p1140_p13, %p1139_p1 }
 0x2dd   : > { %p1142_p9 = pnand %p1141_p6, %p1135_p3 }
 0x2df   : > { %1145 = shalt.err (!%p1142_p9)
}
 0x2e0   : > { %s1198_s17 = smov 128   ;;  %s1199_s22 = smov 8  }
 0x2e1   : > { %956 = dma.vmem_to_hbm [thread:$0]  (%p1558_p7), %s1484_s4, 512, %s1490_s5, %s723_s16, %s1198_s17, %s1198_s17, %s1199_s22  }
 0x2e2 PF: > { %s751_s7 = sand.u32 1, %s1176_s12   ;;  %p1559_p12 = scmp.ne.s32.totalorder %s1548_s24, 0 }
 0x2e3   : > { %p1560_p0 = scmp.ge.s32.totalorder %s1188_s15, 2  ;;  %s752_s11 = scalar_lea.sflag [#allocation4], %s751_s7 }
 0x2e5   : > { %p969_p8 = pnand %p1560_p0, %p1559_p12 }
 0x2e7   : > { %1171 = dma.done.wait (!%p969_p8), %s752_s11, 512  }
 0x2e8   : > { %1173 = vsyncadd (!%p969_p8), %s752_s11, 4294966784  ;;  %p19_p10 = scmp.ge.s32.totalorder %s1245_s18, 4   ;;  %s1561_s12 = smov %s1180_s13 }
 0x2e9   : > { %s1562_s13 = smov %s1184_s14  ;;  %s1563_s14 = smov %s1257_s21 }
 0x2ea   : > { %s1564_s15 = smov %s1245_s18  ;;  %21 = sbr.rel (!%p19_p10) target bundleno = 9 (0x9), region = 101 }
 0x2f1   :  { %757 = vsyncpa [#allocation3], 1 }
 0x2f2   :  { %759 = vsyncpa [#allocation3 + $0x1], 1 }
 0x2f3   :  { %760 = vsyncpa [#allocation6], 1 }
 0x2f4   :  { %762 = vsyncpa [#allocation6 + $0x1], 1 }
 0x2f5   :  { %763 = vsyncpa [#allocation4], 1 }
 0x2f6   :  { %765 = vsyncpa [#allocation4 + $0x1], 1 }

</bundles_post_ra>
